<compile_context>
chip_gen: v7x
topology: tpu7x:2x2x1
jax: 0.10.0
libtpu: 0.0.40
codegen_flags: <defaults>
</compile_context>

<pallas_src>
import functools

import jax
import jax.numpy as jnp
from jax.experimental import pallas as pl
from jax.experimental.pallas import tpu as pltpu

INPUT_SIZE = 28
HIDDEN = 64
NUM_CLASSES = 10


def lstm_kernel(x_ref, wih_ref, whh_ref, wout_ref, bout_ref, out_ref,
                xproj_sc, *, seq_len, b_tile):
    H = HIDDEN
    i_aug = x_ref.shape[-1]

    # ---- 1) input projection (+ folded bias) for every timestep of this
    #         batch tile: one big MXU matmul, accumulated in f32.
    x2d = x_ref[...].reshape(seq_len * b_tile, i_aug)
    xproj = jnp.dot(x2d, wih_ref[...], preferred_element_type=jnp.float32)
    xproj_sc[...] = xproj.reshape(seq_len, b_tile, 4 * H)

    # ---- 2) recurrence: h/c carried in vregs; W_hh loaded once (loop-invariant).
    whh = whh_ref[...]
    mm_dtype = whh.dtype

    def step(t, carry):
        h, c = carry                                           # (b_tile, H) f32
        gates = xproj_sc[t] + jnp.dot(h.astype(mm_dtype), whh,
                                      preferred_element_type=jnp.float32)
        # PyTorch gate order [i, f, g, o]: lanes [0:128)=[i|f], [128:256)=[g|o].
        t_if = gates[:, :2 * H]                                # one 128-lane tile
        t_go = gates[:, 2 * H:]                                # one 128-lane tile
        i_g = jax.nn.sigmoid(t_if[:, :H])
        f_g = jax.nn.sigmoid(pltpu.roll(t_if, H, axis=1)[:, :H])
        g_g = jnp.tanh(t_go[:, :H])
        o_g = jax.nn.sigmoid(pltpu.roll(t_go, H, axis=1)[:, :H])
        c_new = f_g * c + i_g * g_g
        h_new = o_g * jnp.tanh(c_new)
        return h_new, c_new

    h0 = jnp.zeros((b_tile, H), jnp.float32)
    c0 = jnp.zeros((b_tile, H), jnp.float32)
    h_final, _ = jax.lax.fori_loop(0, seq_len, step, (h0, c0),
                                   unroll=min(seq_len, 8))

    # ---- 3) classifier head on the last hidden state.
    out_ref[...] = (jnp.dot(h_final, wout_ref[...],
                            preferred_element_type=jnp.float32)
                    + bout_ref[...])


def pack_params(params, matmul_dtype=jnp.bfloat16):
    """One-time weight packing (hoisted out of the per-call path)."""
    b = (params["b_ih"] + params["b_hh"]).astype(jnp.float32)        # (4H,)
    wih = params["w_ih"].T.astype(jnp.float32)                       # (I, 4H)
    wih_aug = jnp.concatenate([wih, b[None, :]], axis=0)             # (I+1, 4H)
    return {
        "wih_aug": wih_aug.astype(matmul_dtype),                     # (I+1, 4H)
        "whh": params["w_hh"].T.astype(matmul_dtype),                # (H, 4H)
        "wout": params["w_out"].T.astype(jnp.float32),               # (H, C)
        "bout": params["b_out"].reshape(1, NUM_CLASSES).astype(jnp.float32),
    }


@jax.jit
def rnn_forward(x, packed):
    B, T, I = x.shape
    assert I == INPUT_SIZE
    mm_dtype = packed["wih_aug"].dtype
    i_aug = I + 1

    # fold the bias into the projection: append a ones column to x.
    x_aug = jnp.concatenate([x, jnp.ones((B, T, 1), x.dtype)], axis=-1)

    # batch tiling: sublane multiple, <=128 rows per grid step so the batch
    # axis can be sharded across TensorCores ("parallel").
    b8 = max(8, ((B + 7) // 8) * 8)
    b_tile = min(b8, 128)
    n_blk = pl.cdiv(b8, b_tile)
    b_pad = n_blk * b_tile

    x_p = jnp.pad(x_aug, ((0, b_pad - B), (0, 0), (0, 0)))
    x_tbi = jnp.transpose(x_p, (1, 0, 2)).astype(mm_dtype)           # (T, Bp, I+1)

    kernel = functools.partial(lstm_kernel, seq_len=T, b_tile=b_tile)

    # explicit VMEM budget: xproj scratch + double-buffered input block + weights.
    itemsize = jnp.dtype(mm_dtype).itemsize
    xproj_bytes = T * b_tile * 4 * HIDDEN * 4
    xin_bytes = 2 * T * b_tile * i_aug * itemsize
    w_bytes = (i_aug + HIDDEN) * 4 * HIDDEN * itemsize + HIDDEN * NUM_CLASSES * 4
    vmem_limit = int(min(64 << 20,
                         max(16 << 20,
                             2 * (xproj_bytes + xin_bytes + w_bytes) + (2 << 20))))

    out = pl.pallas_call(
        kernel,
        out_shape=jax.ShapeDtypeStruct((b_pad, NUM_CLASSES), jnp.float32),
        grid_spec=pltpu.PrefetchScalarGridSpec(
            num_scalar_prefetch=0,
            grid=(n_blk,),
            in_specs=[
                pl.BlockSpec((T, b_tile, i_aug), lambda b: (0, b, 0)),
                pl.BlockSpec((i_aug, 4 * HIDDEN), lambda b: (0, 0)),
                pl.BlockSpec((HIDDEN, 4 * HIDDEN), lambda b: (0, 0)),
                pl.BlockSpec((HIDDEN, NUM_CLASSES), lambda b: (0, 0)),
                pl.BlockSpec((1, NUM_CLASSES), lambda b: (0, 0)),
            ],
            out_specs=pl.BlockSpec((b_tile, NUM_CLASSES), lambda b: (b, 0)),
            scratch_shapes=[
                pltpu.VMEM((T, b_tile, 4 * HIDDEN), jnp.float32),  # xproj, all t
            ],
        ),
        compiler_params=pltpu.CompilerParams(
            dimension_semantics=("parallel",),
            vmem_limit_bytes=vmem_limit),
    )(x_tbi, packed["wih_aug"], packed["whh"], packed["wout"], packed["bout"])

    return out[:B]


def rnn_reference(x, params):
    """Pure-JAX reference matching PyTorch nn.LSTM + nn.Linear semantics."""
    B, T, _ = x.shape
    h = jnp.zeros((B, HIDDEN), jnp.float32)
    c = jnp.zeros((B, HIDDEN), jnp.float32)
    for t in range(T):
        gates = (x[:, t, :] @ params["w_ih"].T + params["b_ih"]
                 + h @ params["w_hh"].T + params["b_hh"])
        i_g = jax.nn.sigmoid(gates[:, 0 * HIDDEN:1 * HIDDEN])
        f_g = jax.nn.sigmoid(gates[:, 1 * HIDDEN:2 * HIDDEN])
        g_g = jnp.tanh(gates[:, 2 * HIDDEN:3 * HIDDEN])
        o_g = jax.nn.sigmoid(gates[:, 3 * HIDDEN:4 * HIDDEN])
        c = f_g * c + i_g * g_g
        h = o_g * jnp.tanh(c)
    return h @ params["w_out"].T + params["b_out"]


def init_params(key):
    k = 1.0 / jnp.sqrt(HIDDEN)
    keys = jax.random.split(key, 6)
    u = lambda kk, shape: jax.random.uniform(kk, shape, jnp.float32, -k, k)
    return {
        "w_ih": u(keys[0], (4 * HIDDEN, INPUT_SIZE)),
        "w_hh": u(keys[1], (4 * HIDDEN, HIDDEN)),
        "b_ih": u(keys[2], (4 * HIDDEN,)),
        "b_hh": u(keys[3], (4 * HIDDEN,)),
        "w_out": u(keys[4], (NUM_CLASSES, HIDDEN)),
        "b_out": u(keys[5], (NUM_CLASSES,)),
    }


if __name__ == "__main__":
    key = jax.random.PRNGKey(0)
    pkey, xkey = jax.random.split(key)
    params = init_params(pkey)

    B, T = 4, 8
    x = jax.random.normal(xkey, (B, T, INPUT_SIZE), jnp.float32)

    ref = rnn_reference(x, params)

    # exact-parity path: f32 MXU operands.
    out_f32 = jax.block_until_ready(rnn_forward(x, pack_params(params, jnp.float32)))
    assert out_f32.shape == (B, NUM_CLASSES)
    assert jnp.allclose(out_f32, ref, atol=2e-5, rtol=2e-5), "f32 kernel mismatch"

    # perf path (per review): bf16 MXU operands, f32 accumulation.
    out_bf16 = jax.block_until_ready(rnn_forward(x, pack_params(params, jnp.bfloat16)))
    assert jnp.allclose(out_bf16, ref, atol=5e-2, rtol=5e-2), "bf16 kernel mismatch"

    print("KERNEL_OK")
</pallas_src>

<mosaic_0001>
module attributes {stable_mosaic.version = 11 : i64} {
  func.func @lstm_kernel(%arg0: i32, %arg1: memref<8x8x29xf32, #tpu.memory_space<vmem>>, %arg2: memref<29x256xf32, #tpu.memory_space<vmem>>, %arg3: memref<64x256xf32, #tpu.memory_space<vmem>>, %arg4: memref<64x10xf32, #tpu.memory_space<vmem>>, %arg5: memref<1x10xf32, #tpu.memory_space<vmem>>, %arg6: memref<8x10xf32, #tpu.memory_space<vmem>>, %arg7: memref<8x8x256xf32, #tpu.memory_space<vmem>>) attributes {dimension_semantics = [#tpu.dimension_semantics<parallel>], iteration_bounds = array<i64: 1>, scalar_prefetch = 0 : i64, scratch_operands = 1 : i64, tpu.core_type = #tpu.core_type<tc>, window_params = [{transform_indices = @transform_0, window_bounds = array<i64: 8, 8, 29>}, {pipeline_mode = #tpu.pipeline_mode<synchronous>, transform_indices = @transform_1, window_bounds = array<i64: 29, 256>}, {pipeline_mode = #tpu.pipeline_mode<synchronous>, transform_indices = @transform_2, window_bounds = array<i64: 64, 256>}, {pipeline_mode = #tpu.pipeline_mode<synchronous>, transform_indices = @transform_3, window_bounds = array<i64: 64, 10>}, {pipeline_mode = #tpu.pipeline_mode<synchronous>, transform_indices = @transform_4, window_bounds = array<i64: 1, 10>}, {transform_indices = @transform_5, window_bounds = array<i64: 8, 10>}]} {
    %c0 = arith.constant 0 : index
    %c0_0 = arith.constant 0 : index
    %c0_1 = arith.constant 0 : index
    %0 = vector.load %arg1[%c0, %c0_0, %c0_1] : memref<8x8x29xf32, #tpu.memory_space<vmem>>, vector<8x8x29xf32>
    %1 = vector.shape_cast %0 : vector<8x8x29xf32> to vector<64x29xf32>
    %c0_2 = arith.constant 0 : index
    %c0_3 = arith.constant 0 : index
    %2 = vector.load %arg2[%c0_2, %c0_3] : memref<29x256xf32, #tpu.memory_space<vmem>>, vector<29x256xf32>
    %cst = arith.constant dense<0.000000e+00> : vector<64x256xf32>
    %3 = tpu.matmul %1, %2, %cst {dimension_numbers = #tpu.dot_dimension_numbers<[1], [0], [0], [1], [0, 0, 1, 1], [], []>} : vector<64x29xf32>, vector<29x256xf32>, vector<64x256xf32> -> vector<64x256xf32>
    %4 = vector.shape_cast %3 : vector<64x256xf32> to vector<8x8x256xf32>
    %c0_4 = arith.constant 0 : index
    %c0_5 = arith.constant 0 : index
    %c0_6 = arith.constant 0 : index
    %5 = vector.load %arg7[%c0_4, %c0_5, %c0_6] : memref<8x8x256xf32, #tpu.memory_space<vmem>>, vector<8x8x256xf32>
    tpu.vector_store %arg7[%c0_4, %c0_5, %c0_6], %4 {strides = array<i32>} : memref<8x8x256xf32, #tpu.memory_space<vmem>>, vector<8x8x256xf32>,
    %c0_7 = arith.constant 0 : index
    %c0_8 = arith.constant 0 : index
    %6 = vector.load %arg3[%c0_7, %c0_8] : memref<64x256xf32, #tpu.memory_space<vmem>>, vector<64x256xf32>
    %cst_9 = arith.constant 0.000000e+00 : f32
    %7 = vector.broadcast %cst_9 : f32 to vector<8x64xf32>
    %cst_10 = arith.constant 0.000000e+00 : f32
    %8 = vector.broadcast %cst_10 : f32 to vector<8x64xf32>
    %c0_i32 = arith.constant 0 : i32
    %9 = arith.index_cast %c0_i32 : i32 to index
    %c0_11 = arith.constant 0 : index
    %c0_12 = arith.constant 0 : index
    %10 = vector.load %arg7[%9, %c0_11, %c0_12] : memref<8x8x256xf32, #tpu.memory_space<vmem>>, vector<1x8x256xf32>
    %11 = vector.shape_cast %10 : vector<1x8x256xf32> to vector<8x256xf32>
    %cst_13 = arith.constant dense<0.000000e+00> : vector<8x256xf32>
    %12 = tpu.matmul %7, %6, %cst_13 {dimension_numbers = #tpu.dot_dimension_numbers<[1], [0], [0], [1], [0, 0, 1, 1], [], []>} : vector<8x64xf32>, vector<64x256xf32>, vector<8x256xf32> -> vector<8x256xf32>
    %13 = arith.addf %11, %12 : vector<8x256xf32>
    %14 = vector.extract_strided_slice %13 {offsets = [0, 0], sizes = [8, 128], strides = [1, 1]} : vector<8x256xf32> to vector<8x128xf32>
    %15 = vector.extract_strided_slice %13 {offsets = [0, 128], sizes = [8, 128], strides = [1, 1]} : vector<8x256xf32> to vector<8x128xf32>
    %16 = vector.extract_strided_slice %14 {offsets = [0, 0], sizes = [8, 64], strides = [1, 1]} : vector<8x128xf32> to vector<8x64xf32>
    %17 = arith.negf %16 : vector<8x64xf32>
    %18 = math.exp %17 : vector<8x64xf32>
    %cst_14 = arith.constant 1.000000e+00 : f32
    %19 = vector.broadcast %cst_14 : f32 to vector<8x64xf32>
    %20 = arith.addf %19, %18 : vector<8x64xf32>
    %21 = arith.divf %19, %20 : vector<8x64xf32>
    %c64_i32 = arith.constant 64 : i32
    %22 = tpu.dynamic_rotate %14 by %c64_i32 dim 1 : vector<8x128xf32>, i32 -> vector<8x128xf32>
    %23 = vector.extract_strided_slice %22 {offsets = [0, 0], sizes = [8, 64], strides = [1, 1]} : vector<8x128xf32> to vector<8x64xf32>
    %24 = arith.negf %23 : vector<8x64xf32>
    %25 = math.exp %24 : vector<8x64xf32>
    %cst_15 = arith.constant 1.000000e+00 : f32
    %26 = vector.broadcast %cst_15 : f32 to vector<8x64xf32>
    %27 = arith.addf %26, %25 : vector<8x64xf32>
    %28 = arith.divf %26, %27 : vector<8x64xf32>
    %29 = vector.extract_strided_slice %15 {offsets = [0, 0], sizes = [8, 64], strides = [1, 1]} : vector<8x128xf32> to vector<8x64xf32>
    %30 = math.tanh %29 : vector<8x64xf32>
    %c64_i32_16 = arith.constant 64 : i32
    %31 = tpu.dynamic_rotate %15 by %c64_i32_16 dim 1 : vector<8x128xf32>, i32 -> vector<8x128xf32>
    %32 = vector.extract_strided_slice %31 {offsets = [0, 0], sizes = [8, 64], strides = [1, 1]} : vector<8x128xf32> to vector<8x64xf32>
    %33 = arith.negf %32 : vector<8x64xf32>
    %34 = math.exp %33 : vector<8x64xf32>
    %cst_17 = arith.constant 1.000000e+00 : f32
    %35 = vector.broadcast %cst_17 : f32 to vector<8x64xf32>
    %36 = arith.addf %35, %34 : vector<8x64xf32>
    %37 = arith.divf %35, %36 : vector<8x64xf32>
    %38 = arith.mulf %28, %8 : vector<8x64xf32>
    %39 = arith.mulf %21, %30 : vector<8x64xf32>
    %40 = arith.addf %38, %39 : vector<8x64xf32>
    %41 = math.tanh %40 : vector<8x64xf32>
    %42 = arith.mulf %37, %41 : vector<8x64xf32>
    %c1_i32 = arith.constant 1 : i32
    %43 = arith.index_cast %c1_i32 : i32 to index
    %c0_18 = arith.constant 0 : index
    %c0_19 = arith.constant 0 : index
    %44 = vector.load %arg7[%43, %c0_18, %c0_19] : memref<8x8x256xf32, #tpu.memory_space<vmem>>, vector<1x8x256xf32>
    %45 = vector.shape_cast %44 : vector<1x8x256xf32> to vector<8x256xf32>
    %cst_20 = arith.constant dense<0.000000e+00> : vector<8x256xf32>
    %46 = tpu.matmul %42, %6, %cst_20 {dimension_numbers = #tpu.dot_dimension_numbers<[1], [0], [0], [1], [0, 0, 1, 1], [], []>} : vector<8x64xf32>, vector<64x256xf32>, vector<8x256xf32> -> vector<8x256xf32>
    %47 = arith.addf %45, %46 : vector<8x256xf32>
    %48 = vector.extract_strided_slice %47 {offsets = [0, 0], sizes = [8, 128], strides = [1, 1]} : vector<8x256xf32> to vector<8x128xf32>
    %49 = vector.extract_strided_slice %47 {offsets = [0, 128], sizes = [8, 128], strides = [1, 1]} : vector<8x256xf32> to vector<8x128xf32>
    %50 = vector.extract_strided_slice %48 {offsets = [0, 0], sizes = [8, 64], strides = [1, 1]} : vector<8x128xf32> to vector<8x64xf32>
    %51 = arith.negf %50 : vector<8x64xf32>
    %52 = math.exp %51 : vector<8x64xf32>
    %cst_21 = arith.constant 1.000000e+00 : f32
    %53 = vector.broadcast %cst_21 : f32 to vector<8x64xf32>
    %54 = arith.addf %53, %52 : vector<8x64xf32>
    %55 = arith.divf %53, %54 : vector<8x64xf32>
    %c64_i32_22 = arith.constant 64 : i32
    %56 = tpu.dynamic_rotate %48 by %c64_i32_22 dim 1 : vector<8x128xf32>, i32 -> vector<8x128xf32>
    %57 = vector.extract_strided_slice %56 {offsets = [0, 0], sizes = [8, 64], strides = [1, 1]} : vector<8x128xf32> to vector<8x64xf32>
    %58 = arith.negf %57 : vector<8x64xf32>
    %59 = math.exp %58 : vector<8x64xf32>
    %cst_23 = arith.constant 1.000000e+00 : f32
    %60 = vector.broadcast %cst_23 : f32 to vector<8x64xf32>
    %61 = arith.addf %60, %59 : vector<8x64xf32>
    %62 = arith.divf %60, %61 : vector<8x64xf32>
    %63 = vector.extract_strided_slice %49 {offsets = [0, 0], sizes = [8, 64], strides = [1, 1]} : vector<8x128xf32> to vector<8x64xf32>
    %64 = math.tanh %63 : vector<8x64xf32>
    %c64_i32_24 = arith.constant 64 : i32
    %65 = tpu.dynamic_rotate %49 by %c64_i32_24 dim 1 : vector<8x128xf32>, i32 -> vector<8x128xf32>
    %66 = vector.extract_strided_slice %65 {offsets = [0, 0], sizes = [8, 64], strides = [1, 1]} : vector<8x128xf32> to vector<8x64xf32>
    %67 = arith.negf %66 : vector<8x64xf32>
    %68 = math.exp %67 : vector<8x64xf32>
    %cst_25 = arith.constant 1.000000e+00 : f32
    %69 = vector.broadcast %cst_25 : f32 to vector<8x64xf32>
    %70 = arith.addf %69, %68 : vector<8x64xf32>
    %71 = arith.divf %69, %70 : vector<8x64xf32>
    %72 = arith.mulf %62, %40 : vector<8x64xf32>
    %73 = arith.mulf %55, %64 : vector<8x64xf32>
    %74 = arith.addf %72, %73 : vector<8x64xf32>
    %75 = math.tanh %74 : vector<8x64xf32>
    %76 = arith.mulf %71, %75 : vector<8x64xf32>
    %c2_i32 = arith.constant 2 : i32
    %77 = arith.index_cast %c2_i32 : i32 to index
    %c0_26 = arith.constant 0 : index
    %c0_27 = arith.constant 0 : index
    %78 = vector.load %arg7[%77, %c0_26, %c0_27] : memref<8x8x256xf32, #tpu.memory_space<vmem>>, vector<1x8x256xf32>
    %79 = vector.shape_cast %78 : vector<1x8x256xf32> to vector<8x256xf32>
    %cst_28 = arith.constant dense<0.000000e+00> : vector<8x256xf32>
    %80 = tpu.matmul %76, %6, %cst_28 {dimension_numbers = #tpu.dot_dimension_numbers<[1], [0], [0], [1], [0, 0, 1, 1], [], []>} : vector<8x64xf32>, vector<64x256xf32>, vector<8x256xf32> -> vector<8x256xf32>
    %81 = arith.addf %79, %80 : vector<8x256xf32>
    %82 = vector.extract_strided_slice %81 {offsets = [0, 0], sizes = [8, 128], strides = [1, 1]} : vector<8x256xf32> to vector<8x128xf32>
    %83 = vector.extract_strided_slice %81 {offsets = [0, 128], sizes = [8, 128], strides = [1, 1]} : vector<8x256xf32> to vector<8x128xf32>
    %84 = vector.extract_strided_slice %82 {offsets = [0, 0], sizes = [8, 64], strides = [1, 1]} : vector<8x128xf32> to vector<8x64xf32>
    %85 = arith.negf %84 : vector<8x64xf32>
    %86 = math.exp %85 : vector<8x64xf32>
    %cst_29 = arith.constant 1.000000e+00 : f32
    %87 = vector.broadcast %cst_29 : f32 to vector<8x64xf32>
    %88 = arith.addf %87, %86 : vector<8x64xf32>
    %89 = arith.divf %87, %88 : vector<8x64xf32>
    %c64_i32_30 = arith.constant 64 : i32
    %90 = tpu.dynamic_rotate %82 by %c64_i32_30 dim 1 : vector<8x128xf32>, i32 -> vector<8x128xf32>
    %91 = vector.extract_strided_slice %90 {offsets = [0, 0], sizes = [8, 64], strides = [1, 1]} : vector<8x128xf32> to vector<8x64xf32>
    %92 = arith.negf %91 : vector<8x64xf32>
    %93 = math.exp %92 : vector<8x64xf32>
    %cst_31 = arith.constant 1.000000e+00 : f32
    %94 = vector.broadcast %cst_31 : f32 to vector<8x64xf32>
    %95 = arith.addf %94, %93 : vector<8x64xf32>
    %96 = arith.divf %94, %95 : vector<8x64xf32>
    %97 = vector.extract_strided_slice %83 {offsets = [0, 0], sizes = [8, 64], strides = [1, 1]} : vector<8x128xf32> to vector<8x64xf32>
    %98 = math.tanh %97 : vector<8x64xf32>
    %c64_i32_32 = arith.constant 64 : i32
    %99 = tpu.dynamic_rotate %83 by %c64_i32_32 dim 1 : vector<8x128xf32>, i32 -> vector<8x128xf32>
    %100 = vector.extract_strided_slice %99 {offsets = [0, 0], sizes = [8, 64], strides = [1, 1]} : vector<8x128xf32> to vector<8x64xf32>
    %101 = arith.negf %100 : vector<8x64xf32>
    %102 = math.exp %101 : vector<8x64xf32>
    %cst_33 = arith.constant 1.000000e+00 : f32
    %103 = vector.broadcast %cst_33 : f32 to vector<8x64xf32>
    %104 = arith.addf %103, %102 : vector<8x64xf32>
    %105 = arith.divf %103, %104 : vector<8x64xf32>
    %106 = arith.mulf %96, %74 : vector<8x64xf32>
    %107 = arith.mulf %89, %98 : vector<8x64xf32>
    %108 = arith.addf %106, %107 : vector<8x64xf32>
    %109 = math.tanh %108 : vector<8x64xf32>
    %110 = arith.mulf %105, %109 : vector<8x64xf32>
    %c3_i32 = arith.constant 3 : i32
    %111 = arith.index_cast %c3_i32 : i32 to index
    %c0_34 = arith.constant 0 : index
    %c0_35 = arith.constant 0 : index
    %112 = vector.load %arg7[%111, %c0_34, %c0_35] : memref<8x8x256xf32, #tpu.memory_space<vmem>>, vector<1x8x256xf32>
    %113 = vector.shape_cast %112 : vector<1x8x256xf32> to vector<8x256xf32>
    %cst_36 = arith.constant dense<0.000000e+00> : vector<8x256xf32>
    %114 = tpu.matmul %110, %6, %cst_36 {dimension_numbers = #tpu.dot_dimension_numbers<[1], [0], [0], [1], [0, 0, 1, 1], [], []>} : vector<8x64xf32>, vector<64x256xf32>, vector<8x256xf32> -> vector<8x256xf32>
    %115 = arith.addf %113, %114 : vector<8x256xf32>
    %116 = vector.extract_strided_slice %115 {offsets = [0, 0], sizes = [8, 128], strides = [1, 1]} : vector<8x256xf32> to vector<8x128xf32>
    %117 = vector.extract_strided_slice %115 {offsets = [0, 128], sizes = [8, 128], strides = [1, 1]} : vector<8x256xf32> to vector<8x128xf32>
    %118 = vector.extract_strided_slice %116 {offsets = [0, 0], sizes = [8, 64], strides = [1, 1]} : vector<8x128xf32> to vector<8x64xf32>
    %119 = arith.negf %118 : vector<8x64xf32>
    %120 = math.exp %119 : vector<8x64xf32>
    %cst_37 = arith.constant 1.000000e+00 : f32
    %121 = vector.broadcast %cst_37 : f32 to vector<8x64xf32>
    %122 = arith.addf %121, %120 : vector<8x64xf32>
    %123 = arith.divf %121, %122 : vector<8x64xf32>
    %c64_i32_38 = arith.constant 64 : i32
    %124 = tpu.dynamic_rotate %116 by %c64_i32_38 dim 1 : vector<8x128xf32>, i32 -> vector<8x128xf32>
    %125 = vector.extract_strided_slice %124 {offsets = [0, 0], sizes = [8, 64], strides = [1, 1]} : vector<8x128xf32> to vector<8x64xf32>
    %126 = arith.negf %125 : vector<8x64xf32>
    %127 = math.exp %126 : vector<8x64xf32>
    %cst_39 = arith.constant 1.000000e+00 : f32
    %128 = vector.broadcast %cst_39 : f32 to vector<8x64xf32>
    %129 = arith.addf %128, %127 : vector<8x64xf32>
    %130 = arith.divf %128, %129 : vector<8x64xf32>
    %131 = vector.extract_strided_slice %117 {offsets = [0, 0], sizes = [8, 64], strides = [1, 1]} : vector<8x128xf32> to vector<8x64xf32>
    %132 = math.tanh %131 : vector<8x64xf32>
    %c64_i32_40 = arith.constant 64 : i32
    %133 = tpu.dynamic_rotate %117 by %c64_i32_40 dim 1 : vector<8x128xf32>, i32 -> vector<8x128xf32>
    %134 = vector.extract_strided_slice %133 {offsets = [0, 0], sizes = [8, 64], strides = [1, 1]} : vector<8x128xf32> to vector<8x64xf32>
    %135 = arith.negf %134 : vector<8x64xf32>
    %136 = math.exp %135 : vector<8x64xf32>
    %cst_41 = arith.constant 1.000000e+00 : f32
    %137 = vector.broadcast %cst_41 : f32 to vector<8x64xf32>
    %138 = arith.addf %137, %136 : vector<8x64xf32>
    %139 = arith.divf %137, %138 : vector<8x64xf32>
    %140 = arith.mulf %130, %108 : vector<8x64xf32>
    %141 = arith.mulf %123, %132 : vector<8x64xf32>
    %142 = arith.addf %140, %141 : vector<8x64xf32>
    %143 = math.tanh %142 : vector<8x64xf32>
    %144 = arith.mulf %139, %143 : vector<8x64xf32>
    %c4_i32 = arith.constant 4 : i32
    %145 = arith.index_cast %c4_i32 : i32 to index
    %c0_42 = arith.constant 0 : index
    %c0_43 = arith.constant 0 : index
    %146 = vector.load %arg7[%145, %c0_42, %c0_43] : memref<8x8x256xf32, #tpu.memory_space<vmem>>, vector<1x8x256xf32>
    %147 = vector.shape_cast %146 : vector<1x8x256xf32> to vector<8x256xf32>
    %cst_44 = arith.constant dense<0.000000e+00> : vector<8x256xf32>
    %148 = tpu.matmul %144, %6, %cst_44 {dimension_numbers = #tpu.dot_dimension_numbers<[1], [0], [0], [1], [0, 0, 1, 1], [], []>} : vector<8x64xf32>, vector<64x256xf32>, vector<8x256xf32> -> vector<8x256xf32>
    %149 = arith.addf %147, %148 : vector<8x256xf32>
    %150 = vector.extract_strided_slice %149 {offsets = [0, 0], sizes = [8, 128], strides = [1, 1]} : vector<8x256xf32> to vector<8x128xf32>
    %151 = vector.extract_strided_slice %149 {offsets = [0, 128], sizes = [8, 128], strides = [1, 1]} : vector<8x256xf32> to vector<8x128xf32>
    %152 = vector.extract_strided_slice %150 {offsets = [0, 0], sizes = [8, 64], strides = [1, 1]} : vector<8x128xf32> to vector<8x64xf32>
    %153 = arith.negf %152 : vector<8x64xf32>
    %154 = math.exp %153 : vector<8x64xf32>
    %cst_45 = arith.constant 1.000000e+00 : f32
    %155 = vector.broadcast %cst_45 : f32 to vector<8x64xf32>
    %156 = arith.addf %155, %154 : vector<8x64xf32>
    %157 = arith.divf %155, %156 : vector<8x64xf32>
    %c64_i32_46 = arith.constant 64 : i32
    %158 = tpu.dynamic_rotate %150 by %c64_i32_46 dim 1 : vector<8x128xf32>, i32 -> vector<8x128xf32>
    %159 = vector.extract_strided_slice %158 {offsets = [0, 0], sizes = [8, 64], strides = [1, 1]} : vector<8x128xf32> to vector<8x64xf32>
    %160 = arith.negf %159 : vector<8x64xf32>
    %161 = math.exp %160 : vector<8x64xf32>
    %cst_47 = arith.constant 1.000000e+00 : f32
    %162 = vector.broadcast %cst_47 : f32 to vector<8x64xf32>
    %163 = arith.addf %162, %161 : vector<8x64xf32>
    %164 = arith.divf %162, %163 : vector<8x64xf32>
    %165 = vector.extract_strided_slice %151 {offsets = [0, 0], sizes = [8, 64], strides = [1, 1]} : vector<8x128xf32> to vector<8x64xf32>
    %166 = math.tanh %165 : vector<8x64xf32>
    %c64_i32_48 = arith.constant 64 : i32
    %167 = tpu.dynamic_rotate %151 by %c64_i32_48 dim 1 : vector<8x128xf32>, i32 -> vector<8x128xf32>
    %168 = vector.extract_strided_slice %167 {offsets = [0, 0], sizes = [8, 64], strides = [1, 1]} : vector<8x128xf32> to vector<8x64xf32>
    %169 = arith.negf %168 : vector<8x64xf32>
    %170 = math.exp %169 : vector<8x64xf32>
    %cst_49 = arith.constant 1.000000e+00 : f32
    %171 = vector.broadcast %cst_49 : f32 to vector<8x64xf32>
    %172 = arith.addf %171, %170 : vector<8x64xf32>
    %173 = arith.divf %171, %172 : vector<8x64xf32>
    %174 = arith.mulf %164, %142 : vector<8x64xf32>
    %175 = arith.mulf %157, %166 : vector<8x64xf32>
    %176 = arith.addf %174, %175 : vector<8x64xf32>
    %177 = math.tanh %176 : vector<8x64xf32>
    %178 = arith.mulf %173, %177 : vector<8x64xf32>
    %c5_i32 = arith.constant 5 : i32
    %179 = arith.index_cast %c5_i32 : i32 to index
    %c0_50 = arith.constant 0 : index
    %c0_51 = arith.constant 0 : index
    %180 = vector.load %arg7[%179, %c0_50, %c0_51] : memref<8x8x256xf32, #tpu.memory_space<vmem>>, vector<1x8x256xf32>
    %181 = vector.shape_cast %180 : vector<1x8x256xf32> to vector<8x256xf32>
    %cst_52 = arith.constant dense<0.000000e+00> : vector<8x256xf32>
    %182 = tpu.matmul %178, %6, %cst_52 {dimension_numbers = #tpu.dot_dimension_numbers<[1], [0], [0], [1], [0, 0, 1, 1], [], []>} : vector<8x64xf32>, vector<64x256xf32>, vector<8x256xf32> -> vector<8x256xf32>
    %183 = arith.addf %181, %182 : vector<8x256xf32>
    %184 = vector.extract_strided_slice %183 {offsets = [0, 0], sizes = [8, 128], strides = [1, 1]} : vector<8x256xf32> to vector<8x128xf32>
    %185 = vector.extract_strided_slice %183 {offsets = [0, 128], sizes = [8, 128], strides = [1, 1]} : vector<8x256xf32> to vector<8x128xf32>
    %186 = vector.extract_strided_slice %184 {offsets = [0, 0], sizes = [8, 64], strides = [1, 1]} : vector<8x128xf32> to vector<8x64xf32>
    %187 = arith.negf %186 : vector<8x64xf32>
    %188 = math.exp %187 : vector<8x64xf32>
    %cst_53 = arith.constant 1.000000e+00 : f32
    %189 = vector.broadcast %cst_53 : f32 to vector<8x64xf32>
    %190 = arith.addf %189, %188 : vector<8x64xf32>
    %191 = arith.divf %189, %190 : vector<8x64xf32>
    %c64_i32_54 = arith.constant 64 : i32
    %192 = tpu.dynamic_rotate %184 by %c64_i32_54 dim 1 : vector<8x128xf32>, i32 -> vector<8x128xf32>
    %193 = vector.extract_strided_slice %192 {offsets = [0, 0], sizes = [8, 64], strides = [1, 1]} : vector<8x128xf32> to vector<8x64xf32>
    %194 = arith.negf %193 : vector<8x64xf32>
    %195 = math.exp %194 : vector<8x64xf32>
    %cst_55 = arith.constant 1.000000e+00 : f32
    %196 = vector.broadcast %cst_55 : f32 to vector<8x64xf32>
    %197 = arith.addf %196, %195 : vector<8x64xf32>
    %198 = arith.divf %196, %197 : vector<8x64xf32>
    %199 = vector.extract_strided_slice %185 {offsets = [0, 0], sizes = [8, 64], strides = [1, 1]} : vector<8x128xf32> to vector<8x64xf32>
    %200 = math.tanh %199 : vector<8x64xf32>
    %c64_i32_56 = arith.constant 64 : i32
    %201 = tpu.dynamic_rotate %185 by %c64_i32_56 dim 1 : vector<8x128xf32>, i32 -> vector<8x128xf32>
    %202 = vector.extract_strided_slice %201 {offsets = [0, 0], sizes = [8, 64], strides = [1, 1]} : vector<8x128xf32> to vector<8x64xf32>
    %203 = arith.negf %202 : vector<8x64xf32>
    %204 = math.exp %203 : vector<8x64xf32>
    %cst_57 = arith.constant 1.000000e+00 : f32
    %205 = vector.broadcast %cst_57 : f32 to vector<8x64xf32>
    %206 = arith.addf %205, %204 : vector<8x64xf32>
    %207 = arith.divf %205, %206 : vector<8x64xf32>
    %208 = arith.mulf %198, %176 : vector<8x64xf32>
    %209 = arith.mulf %191, %200 : vector<8x64xf32>
    %210 = arith.addf %208, %209 : vector<8x64xf32>
    %211 = math.tanh %210 : vector<8x64xf32>
    %212 = arith.mulf %207, %211 : vector<8x64xf32>
    %c6_i32 = arith.constant 6 : i32
    %213 = arith.index_cast %c6_i32 : i32 to index
    %c0_58 = arith.constant 0 : index
    %c0_59 = arith.constant 0 : index
    %214 = vector.load %arg7[%213, %c0_58, %c0_59] : memref<8x8x256xf32, #tpu.memory_space<vmem>>, vector<1x8x256xf32>
    %215 = vector.shape_cast %214 : vector<1x8x256xf32> to vector<8x256xf32>
    %cst_60 = arith.constant dense<0.000000e+00> : vector<8x256xf32>
    %216 = tpu.matmul %212, %6, %cst_60 {dimension_numbers = #tpu.dot_dimension_numbers<[1], [0], [0], [1], [0, 0, 1, 1], [], []>} : vector<8x64xf32>, vector<64x256xf32>, vector<8x256xf32> -> vector<8x256xf32>
    %217 = arith.addf %215, %216 : vector<8x256xf32>
    %218 = vector.extract_strided_slice %217 {offsets = [0, 0], sizes = [8, 128], strides = [1, 1]} : vector<8x256xf32> to vector<8x128xf32>
    %219 = vector.extract_strided_slice %217 {offsets = [0, 128], sizes = [8, 128], strides = [1, 1]} : vector<8x256xf32> to vector<8x128xf32>
    %220 = vector.extract_strided_slice %218 {offsets = [0, 0], sizes = [8, 64], strides = [1, 1]} : vector<8x128xf32> to vector<8x64xf32>
    %221 = arith.negf %220 : vector<8x64xf32>
    %222 = math.exp %221 : vector<8x64xf32>
    %cst_61 = arith.constant 1.000000e+00 : f32
    %223 = vector.broadcast %cst_61 : f32 to vector<8x64xf32>
    %224 = arith.addf %223, %222 : vector<8x64xf32>
    %225 = arith.divf %223, %224 : vector<8x64xf32>
    %c64_i32_62 = arith.constant 64 : i32
    %226 = tpu.dynamic_rotate %218 by %c64_i32_62 dim 1 : vector<8x128xf32>, i32 -> vector<8x128xf32>
    %227 = vector.extract_strided_slice %226 {offsets = [0, 0], sizes = [8, 64], strides = [1, 1]} : vector<8x128xf32> to vector<8x64xf32>
    %228 = arith.negf %227 : vector<8x64xf32>
    %229 = math.exp %228 : vector<8x64xf32>
    %cst_63 = arith.constant 1.000000e+00 : f32
    %230 = vector.broadcast %cst_63 : f32 to vector<8x64xf32>
    %231 = arith.addf %230, %229 : vector<8x64xf32>
    %232 = arith.divf %230, %231 : vector<8x64xf32>
    %233 = vector.extract_strided_slice %219 {offsets = [0, 0], sizes = [8, 64], strides = [1, 1]} : vector<8x128xf32> to vector<8x64xf32>
    %234 = math.tanh %233 : vector<8x64xf32>
    %c64_i32_64 = arith.constant 64 : i32
    %235 = tpu.dynamic_rotate %219 by %c64_i32_64 dim 1 : vector<8x128xf32>, i32 -> vector<8x128xf32>
    %236 = vector.extract_strided_slice %235 {offsets = [0, 0], sizes = [8, 64], strides = [1, 1]} : vector<8x128xf32> to vector<8x64xf32>
    %237 = arith.negf %236 : vector<8x64xf32>
    %238 = math.exp %237 : vector<8x64xf32>
    %cst_65 = arith.constant 1.000000e+00 : f32
    %239 = vector.broadcast %cst_65 : f32 to vector<8x64xf32>
    %240 = arith.addf %239, %238 : vector<8x64xf32>
    %241 = arith.divf %239, %240 : vector<8x64xf32>
    %242 = arith.mulf %232, %210 : vector<8x64xf32>
    %243 = arith.mulf %225, %234 : vector<8x64xf32>
    %244 = arith.addf %242, %243 : vector<8x64xf32>
    %245 = math.tanh %244 : vector<8x64xf32>
    %246 = arith.mulf %241, %245 : vector<8x64xf32>
    %c7_i32 = arith.constant 7 : i32
    %247 = arith.index_cast %c7_i32 : i32 to index
    %c0_66 = arith.constant 0 : index
    %c0_67 = arith.constant 0 : index
    %248 = vector.load %arg7[%247, %c0_66, %c0_67] : memref<8x8x256xf32, #tpu.memory_space<vmem>>, vector<1x8x256xf32>
    %249 = vector.shape_cast %248 : vector<1x8x256xf32> to vector<8x256xf32>
    %cst_68 = arith.constant dense<0.000000e+00> : vector<8x256xf32>
    %250 = tpu.matmul %246, %6, %cst_68 {dimension_numbers = #tpu.dot_dimension_numbers<[1], [0], [0], [1], [0, 0, 1, 1], [], []>} : vector<8x64xf32>, vector<64x256xf32>, vector<8x256xf32> -> vector<8x256xf32>
    %251 = arith.addf %249, %250 : vector<8x256xf32>
    %252 = vector.extract_strided_slice %251 {offsets = [0, 0], sizes = [8, 128], strides = [1, 1]} : vector<8x256xf32> to vector<8x128xf32>
    %253 = vector.extract_strided_slice %251 {offsets = [0, 128], sizes = [8, 128], strides = [1, 1]} : vector<8x256xf32> to vector<8x128xf32>
    %254 = vector.extract_strided_slice %252 {offsets = [0, 0], sizes = [8, 64], strides = [1, 1]} : vector<8x128xf32> to vector<8x64xf32>
    %255 = arith.negf %254 : vector<8x64xf32>
    %256 = math.exp %255 : vector<8x64xf32>
    %cst_69 = arith.constant 1.000000e+00 : f32
    %257 = vector.broadcast %cst_69 : f32 to vector<8x64xf32>
    %258 = arith.addf %257, %256 : vector<8x64xf32>
    %259 = arith.divf %257, %258 : vector<8x64xf32>
    %c64_i32_70 = arith.constant 64 : i32
    %260 = tpu.dynamic_rotate %252 by %c64_i32_70 dim 1 : vector<8x128xf32>, i32 -> vector<8x128xf32>
    %261 = vector.extract_strided_slice %260 {offsets = [0, 0], sizes = [8, 64], strides = [1, 1]} : vector<8x128xf32> to vector<8x64xf32>
    %262 = arith.negf %261 : vector<8x64xf32>
    %263 = math.exp %262 : vector<8x64xf32>
    %cst_71 = arith.constant 1.000000e+00 : f32
    %264 = vector.broadcast %cst_71 : f32 to vector<8x64xf32>
    %265 = arith.addf %264, %263 : vector<8x64xf32>
    %266 = arith.divf %264, %265 : vector<8x64xf32>
    %267 = vector.extract_strided_slice %253 {offsets = [0, 0], sizes = [8, 64], strides = [1, 1]} : vector<8x128xf32> to vector<8x64xf32>
    %268 = math.tanh %267 : vector<8x64xf32>
    %c64_i32_72 = arith.constant 64 : i32
    %269 = tpu.dynamic_rotate %253 by %c64_i32_72 dim 1 : vector<8x128xf32>, i32 -> vector<8x128xf32>
    %270 = vector.extract_strided_slice %269 {offsets = [0, 0], sizes = [8, 64], strides = [1, 1]} : vector<8x128xf32> to vector<8x64xf32>
    %271 = arith.negf %270 : vector<8x64xf32>
    %272 = math.exp %271 : vector<8x64xf32>
    %cst_73 = arith.constant 1.000000e+00 : f32
    %273 = vector.broadcast %cst_73 : f32 to vector<8x64xf32>
    %274 = arith.addf %273, %272 : vector<8x64xf32>
    %275 = arith.divf %273, %274 : vector<8x64xf32>
    %276 = arith.mulf %266, %244 : vector<8x64xf32>
    %277 = arith.mulf %259, %268 : vector<8x64xf32>
    %278 = arith.addf %276, %277 : vector<8x64xf32>
    %279 = math.tanh %278 : vector<8x64xf32>
    %280 = arith.mulf %275, %279 : vector<8x64xf32>
    %c8_i32 = arith.constant 8 : i32
    %c0_74 = arith.constant 0 : index
    %c0_75 = arith.constant 0 : index
    %281 = vector.load %arg4[%c0_74, %c0_75] : memref<64x10xf32, #tpu.memory_space<vmem>>, vector<64x10xf32>
    %cst_76 = arith.constant dense<0.000000e+00> : vector<8x10xf32>
    %282 = tpu.matmul %280, %281, %cst_76 {dimension_numbers = #tpu.dot_dimension_numbers<[1], [0], [0], [1], [0, 0, 1, 1], [], []>} : vector<8x64xf32>, vector<64x10xf32>, vector<8x10xf32> -> vector<8x10xf32>
    %c0_77 = arith.constant 0 : index
    %c0_78 = arith.constant 0 : index
    %283 = vector.load %arg5[%c0_77, %c0_78] : memref<1x10xf32, #tpu.memory_space<vmem>>, vector<1x10xf32>
    %284 = vector.broadcast %283 : vector<1x10xf32> to vector<8x10xf32>
    %285 = arith.addf %282, %284 : vector<8x10xf32>
    %c0_79 = arith.constant 0 : index
    %c0_80 = arith.constant 0 : index
    %286 = vector.load %arg6[%c0_79, %c0_80] : memref<8x10xf32, #tpu.memory_space<vmem>>, vector<8x10xf32>
    tpu.vector_store %arg6[%c0_79, %c0_80], %285 {strides = array<i32>} : memref<8x10xf32, #tpu.memory_space<vmem>>, vector<8x10xf32>,
    return
  }
  func.func @transform_0(%arg0: i32) -> (i32, i32, i32) {
    %c0_i32 = arith.constant 0 : i32
    %c0_i32_0 = arith.constant 0 : i32
    %c0_i32_1 = arith.constant 0 : i32
    return %c0_i32, %arg0, %c0_i32_0 : i32, i32, i32
  }
  func.func @transform_1(%arg0: i32) -> (i32, i32) {
    %c0_i32 = arith.constant 0 : i32
    %c0_i32_0 = arith.constant 0 : i32
    %c0_i32_1 = arith.constant 0 : i32
    return %c0_i32, %c0_i32_0 : i32, i32
  }
  func.func @transform_2(%arg0: i32) -> (i32, i32) {
    %c0_i32 = arith.constant 0 : i32
    %c0_i32_0 = arith.constant 0 : i32
    %c0_i32_1 = arith.constant 0 : i32
    return %c0_i32, %c0_i32_0 : i32, i32
  }
  func.func @transform_3(%arg0: i32) -> (i32, i32) {
    %c0_i32 = arith.constant 0 : i32
    %c0_i32_0 = arith.constant 0 : i32
    %c0_i32_1 = arith.constant 0 : i32
    return %c0_i32, %c0_i32_0 : i32, i32
  }
  func.func @transform_4(%arg0: i32) -> (i32, i32) {
    %c0_i32 = arith.constant 0 : i32
    %c0_i32_0 = arith.constant 0 : i32
    %c0_i32_1 = arith.constant 0 : i32
    return %c0_i32, %c0_i32_0 : i32, i32
  }
  func.func @transform_5(%arg0: i32) -> (i32, i32) {
    %c0_i32 = arith.constant 0 : i32
    %c0_i32_0 = arith.constant 0 : i32
    return %arg0, %c0_i32 : i32, i32
  }
}

</mosaic_0001>

<bundles_post_ra>
// kernel: rnn_forward.1
= control target key start
LH: loop header
LB: loop body
LE: loop exit
PB: predicated region body
PF: predicated region fallthrough
CT: control target
= control target key end

     0   :  { %vm61_vm0 = vcmask 1044480   ;;  %v1533_v3 = vmov 0.0   ;;  %vm1534_vm1 = vmmov 1   ;;  %vm36_vm3 = vcmask 236544   ;;  %s1863_s1 = inlined_call_operand.vmem [shape: f32[29,256], index: 1, kind: input, shape index: {}]   ;;  %s1864_s2 = inlined_call_operand.vmem [shape: f32[64,256], index: 2, kind: input, shape index: {}]   ;;  %s1865_s0 = inlined_call_operand.vmem [shape: f32[8,8,29], index: 0, kind: input, shape index: {}]   ;;  %s1866_s3 = inlined_call_operand.vmem [shape: f32[64,10], index: 3, kind: input, shape index: {}]   ;;  %s1867_s4 = inlined_call_operand.vmem [shape: f32[1,10], index: 4, kind: input, shape index: {}]   ;;  %s1868_s5 = inlined_call_operand.vmem [shape: f32[8,10], index: 5, kind: output, shape index: {}]  }
   0x1   :  { %v29_v0 = vld [vmem:[%s1863_s1 + $0x8] sm:$0xff]  ;;  %v31_v1 = vld [vmem:[%s1863_s1 + $0x18] sm:$0xff]  ;;  %v28_v2 = vld [vmem:[%s1863_s1] sm:$0xff]  ;;  %132 = vmatprep.mubr.f32.mxu1 %v1533_v3  ;;  %604 = vmatprep.mubr.f32.mxu0 %v1533_v3  ;;  %vm215_vm4 = vcmask 523264   ;;  %vm1537_vm5 = vmmov 0   ;;  %vm1157_vm6 = vcmask 80896  }
   0x2   :  { %v1234_v4 = vpack.c.bf16 %v31_v1, %v29_v0  ;;  %v30_v5 = vld [vmem:[%s1863_s1 + $0x10] sm:$0xff]  ;;  %v33_v6 = vld [vmem:[%s1863_s1 + $0x28] sm:$0xff]  ;;  %v35_v7 = vld [vmem:[%s1863_s1 + $0x38] sm:$0x1f] }
   0x3   :  { %v1236_v8 = vpack.c.bf16 %v30_v5, %v28_v2  ;;  %v1238_v9 = vpack.c.bf16 %v35_v7, %v33_v6  ;;  %vm1589_vm2 = vmpackc.low %vm61_vm0, %vm1534_vm1  ;;  %v32_v11 = vld [vmem:[%s1863_s1 + $0x20] sm:$0xff]  ;;  %v34_v12 = vld [vmem:[%s1863_s1 + $0x30] sm:$0x1f] }
   0x4   :  { %1235 = vmatprep.subr.bf16.mxu1 %v1234_v4  ;;  %v198_v13 = vld [vmem:[%s1864_s2 + $0x8] sm:$0xff]  ;;  %v200_v14 = vld [vmem:[%s1864_s2 + $0x18] sm:$0xff]  ;;  %v1241_v15 = vpack.c.bf16 %v34_v12, %v32_v11  ;;  %v197_v17 = vld [vmem:[%s1864_s2] sm:$0xff] }
   0x5   :  { %1237 = vmatpush1.bf16.msra.mxu1 %v1236_v8  ;;  %v1605_v16 = vpack.c.bf16 %v200_v14, %v198_v13  ;;  %v199_v18 = vld [vmem:[%s1864_s2 + $0x10] sm:$0xff]  ;;  %v202_v20 = vld [vmem:[%s1864_s2 + $0x28] sm:$0xff]  ;;  %v204_v21 = vld [vmem:[%s1864_s2 + $0x38] sm:$0xff] }
   0x6   :  { %1240 = vmatprep.subr.msk.bf16.mxu1 %vm1589_vm2, %v1238_v9  ;;  %v1615_v19 = vpack.c.bf16 %v199_v18, %v197_v17  ;;  %v1623_v22 = vpack.c.bf16 %v204_v21, %v202_v20  ;;  %v201_v23 = vld [vmem:[%s1864_s2 + $0x20] sm:$0xff]  ;;  %v203_v24 = vld [vmem:[%s1864_s2 + $0x30] sm:$0xff]  ;;  %v206_v26 = vld [vmem:[%s1864_s2 + $0x48] sm:$0xff] }
   0x7   :  { %1293 = vmatprep.subr.bf16.mxu0 %v1605_v16  ;;  %v20_v25 = vld [vmem:[%s1865_s0] sm:$0xff]  ;;  %v208_v27 = vld [vmem:[%s1864_s2 + $0x58] sm:$0xff]  ;;  %v1646_v28 = vpack.c.bf16 %v203_v24, %v201_v23  ;;  %v207_v30 = vld [vmem:[%s1864_s2 + $0x50] sm:$0xff] }
   0x8   :  { %1295 = vmatpush1.bf16.msra.mxu0 %v1615_v19  ;;  %v205_v29 = vld [vmem:[%s1864_s2 + $0x40] sm:$0xff]  ;;  %v1655_v31 = vpack.c.bf16 %v208_v27, %v206_v26  ;;  %v21_v32 = vld [vmem:[%s1865_s0 + $0x8] sm:$0xff]  ;;  %v212_v34 = vld [vmem:[%s1864_s2 + $0x78] sm:$0xff] }
   0x9   :  { %1243 = vmatpush1.bf16.msk.msra.mxu1 %vm1589_vm2, %v1241_v15  ;;  %1297 = vmatprep.subr.bf16.mxu0 %v1623_v22  ;;  %v210_v33 = vld [vmem:[%s1864_s2 + $0x68] sm:$0xff]  ;;  %v1670_v35 = vpack.c.bf16 %v207_v30, %v205_v29  ;;  %v209_v36 = vld [vmem:[%s1864_s2 + $0x60] sm:$0xff]  ;;  %v211_v37 = vld [vmem:[%s1864_s2 + $0x70] sm:$0xff] }
   0xa   :  { %1245 = vmatprep.subr.bf16.mxu1 %v1605_v16  ;;  %v1680_v38 = vpack.c.bf16 %v212_v34, %v210_v33  ;;  %v22_v39 = vld [vmem:[%s1865_s0 + $0x10] sm:$0xff]  ;;  %v1689_v40 = vpack.c.bf16 %v211_v37, %v209_v36  ;;  %v23_v41 = vld [vmem:[%s1865_s0 + $0x18] sm:$0xff]  ;;  %v24_v42 = vld [vmem:[%s1865_s0 + $0x20] sm:$0xff] }
   0xb   :  { %v25_v43 = vld [vmem:[%s1865_s0 + $0x28] sm:$0xff]  ;;  %v26_v44 = vld [vmem:[%s1865_s0 + $0x30] sm:$0xff]  ;;  %v27_v45 = vld [vmem:[%s1865_s0 + $0x38] sm:$0xff]  ;;  %s1535_s0 = smov 64  }
   0xc   :  { %1165 = vmatmul.mubr.msk.f32.vlgmr.msra.gmra.mrb[0].mxu1 %vm36_vm3, %v20_v25  ;;  %1299 = vmatpush1.bf16.msra.mxu0 %v1646_v28 }
   0xd   :  { %1247 = vmatpush1.bf16.msra.mxu1 %v1615_v19  ;;  %138 = vmatprep.mubr.f32.mxu1 %v1533_v3 }
   0xe   :  { %1249 = vmatprep.subr.bf16.mxu1 %v1623_v22  ;;  %1301 = vmatprep.subr.bf16.mxu0 %v1655_v31 }
  0x10   :  { %1166 = vmatmul.mubr.msk.f32.gmra.mrb[2].mxu1 %vm36_vm3, %v21_v32  ;;  %1303 = vmatpush1.bf16.msra.mxu0 %v1670_v35 }
  0x11   :  { %144 = vmatprep.mubr.f32.mxu1 %v1533_v3  ;;  %1251 = vmatpush1.bf16.msra.mxu1 %v1646_v28 }
  0x12   :  { %1253 = vmatprep.subr.bf16.mxu1 %v1655_v31  ;;  %1305 = vmatprep.subr.bf16.mxu0 %v1680_v38 }
  0x14   :  { %1167 = vmatmul.mubr.msk.f32.gmra.mrb[4].mxu1 %vm36_vm3, %v22_v39  ;;  %1307 = vmatpush1.bf16.msra.mxu0 %v1689_v40 }
  0x15   :  { %150 = vmatprep.mubr.f32.mxu1 %v1533_v3  ;;  %1255 = vmatpush1.bf16.msra.mxu1 %v1670_v35 }
  0x16   :  { %1257 = vmatprep.subr.bf16.mxu1 %v1680_v38  ;;  %1309 = vmatprep.subr.bf16.mxu0 %v1605_v16 }
  0x18   :  { %1168 = vmatmul.mubr.msk.f32.gmra.mrb[6].mxu1 %vm36_vm3, %v23_v41 }
  0x19   :  { %156 = vmatprep.mubr.f32.mxu1 %v1533_v3  ;;  %1259 = vmatpush1.bf16.msra.mxu1 %v1689_v40 }
  0x1a   :  { %1261 = vmatprep.subr.bf16.mxu1 %v1605_v16 }
  0x1c   :  { %1169 = vmatmul.mubr.msk.f32.gmra.mrb[8].mxu1 %vm36_vm3, %v24_v42 }
  0x1d   :  { %162 = vmatprep.mubr.f32.mxu1 %v1533_v3 }
  0x20   :  { %1170 = vmatmul.mubr.msk.f32.gmra.mrb[10].mxu1 %vm36_vm3, %v25_v43 }
  0x21   :  { %168 = vmatprep.mubr.f32.mxu1 %v1533_v3 }
  0x24   :  { %1171 = vmatmul.mubr.msk.f32.gmra.mrb[12].mxu1 %vm36_vm3, %v26_v44 }
  0x25   :  { %174 = vmatprep.mubr.f32.mxu1 %v1533_v3 }
  0x28   :  { %1172 = vmatmul.mubr.msk.f32.gmra.mrb[14].mxu1 %vm36_vm3, %v27_v45 }
  0x29   :  { %283 = vmatprep.mubr.f32.mxu1 %v1533_v3 }
  0x2c   :  { %284 = vmatmul.mubr.f32.vlgmr.msra.gmra.mrb[0].mxu1 %v1533_v3 }
  0x2d   :  { %1263 = vmatpush1.bf16.msra.mxu1 %v1615_v19  ;;  %390 = vmatprep.mubr.f32.mxu1 %v1533_v3 }
  0x2e   :  { %1265 = vmatprep.subr.bf16.mxu1 %v1623_v22 }
  0x31   :  { %1267 = vmatpush1.bf16.msra.mxu1 %v1646_v28 }
  0x32   :  { %1269 = vmatprep.subr.bf16.mxu1 %v1655_v31 }
  0x35   :  { %1271 = vmatpush1.bf16.msra.mxu1 %v1670_v35 }
  0x36   :  { %1273 = vmatprep.subr.bf16.mxu1 %v1680_v38 }
  0x39   :  { %1275 = vmatpush1.bf16.msra.mxu1 %v1689_v40 }
  0x3a   :  { %1277 = vmatprep.subr.bf16.mxu1 %v1605_v16 }
  0xeb   :  { %v1735_v46 = vpop.f32.mrb[6].mxu1 }
  0xec   :  { %v1737_v47 = vpop.f32.mrb[7].mxu1 }
  0xef   :  { %v1739_v48 = vpop.f32.mrb[8].mxu1 }
  0xf0   :  { %v1741_v49 = vpop.f32.mrb[9].mxu1 }
  0xf3   :  { %v1743_v50 = vpop.f32.mrb[10].mxu1 }
  0xf4   :  { %v1745_v51 = vpop.f32.mrb[11].mxu1 }
  0xf7   :  { %v1747_v52 = vpop.f32.mrb[12].mxu1 }
  0xf8   :  { %v1749_v53 = vpop.f32.mrb[13].mxu1 }
  0xfb   :  { %v1751_v54 = vpop.f32.mrb[14].mxu1 }
  0xfc   :  { %v1753_v55 = vpop.f32.mrb[15].mxu1 }
  0xff   :  { %v285_v56 = vpop.f32.mrb[0].mxu1 }
 0x100   :  { %v1173_v57 = vmul.f32 -1.442695, %v285_v56  ;;  %298 = vrot.lane.b32.xlu0 %v285_v56, %s1535_s0  ;;  %v287_v58 = vpop.f32.mrb[1].mxu1 }
 0x102   :  { %1405 = vpow2.f32 %v1173_v57 }
 0x103   :  { %1407 = vtanh.f32 %v287_v58 }
 0x104   :  { %307 = vrot.lane.b32.xlu0 %v287_v58, %s1535_s0 }
 0x10c   :  { %v1406_v59 = vpop.eup %1405 }
 0x10d   :  { %v295_v60 = vadd.f32 1.0, %v1406_v59  ;;  %v1408_v61 = vpop.eup %1407 }
 0x10f   :  { %1409 = vrcp.f32 %v295_v60 }
 0x119   :  { %v1410_v62 = vpop.eup %1409 }
 0x11a   :  { %v316_v63 = vmul.f32 %v1410_v62, %v1408_v61 }
 0x172   :  { %v299_v0 = vpop.permute.xlu0 %298 }
 0x173   :  { %v1174_v1 = vmul.f32 -1.442695, %v299_v0 }
 0x175   :  { %1411 = vpow2.f32 %v1174_v1 }
 0x176   :  { %v308_v2 = vpop.permute.xlu0 %307 }
 0x177   :  { %v1175_v4 = vmul.f32 -1.442695, %v308_v2 }
 0x179   :  { %1413 = vpow2.f32 %v1175_v4 }
 0x17f   :  { %v1412_v5 = vpop.eup %1411 }
 0x180   :  { %v303_v6 = vadd.f32 1.0, %v1412_v5 }
 0x182   :  { %1415 = vrcp.f32 %v303_v6 }
 0x183   :  { %v1414_v7 = vpop.eup %1413 }
 0x184   :  { %v312_v9 = vadd.f32 1.0, %v1414_v7 }
 0x186   :  { %1417 = vrcp.f32 %v312_v9 }
 0x18c   :  { %v1416_v8 = vpop.eup %1415 }
 0x18d   :  { %v315_v10 = vmul.f32 0.0, %v1416_v8 }
 0x18f   :  { %v317_v11 = vadd.f32 %v316_v63, %v315_v10 }
 0x190   :  { %v1418_v12 = vpop.eup %1417 }
 0x191   :  { %1419 = vtanh.f32 %v317_v11 }
 0x19b   :  { %v1420_v13 = vpop.eup %1419 }
 0x19c   :  { %v319_v14 = vmul.f32 %v1420_v13, %v1418_v12 }
 0x19e   :  { %1176 = vmatmul.mubr.msk.f32.vlgmr.msra.gmra.mrb[2].mxu1 %vm215_vm4, %v319_v14 }
 0x19f   :  { %1279 = vmatpush1.bf16.msra.mxu1 %v1615_v19  ;;  %497 = vmatprep.mubr.f32.mxu1 %v1533_v3 }
 0x1a0   :  { %1281 = vmatprep.subr.bf16.mxu1 %v1623_v22 }
 0x1a3   :  { %1283 = vmatpush1.bf16.msra.mxu1 %v1646_v28 }
 0x1a4   :  { %1285 = vmatprep.subr.bf16.mxu1 %v1655_v31 }
 0x1a7   :  { %1287 = vmatpush1.bf16.msra.mxu1 %v1670_v35 }
 0x1a8   :  { %1289 = vmatprep.subr.bf16.mxu1 %v1680_v38 }
 0x1ab   :  { %1291 = vmatpush1.bf16.msra.mxu1 %v1689_v40 }
 0x271   :  { %v392_v15 = vpop.f32.mrb[2].mxu1 }
 0x272   :  { %v1177_v17 = vmul.f32 -1.442695, %v392_v15  ;;  %405 = vrot.lane.b32.xlu1 %v392_v15, %s1535_s0  ;;  %v394_v18 = vpop.f32.mrb[3].mxu1 }
 0x274   :  { %1421 = vpow2.f32 %v1177_v17 }
 0x275   :  { %1423 = vtanh.f32 %v394_v18 }
 0x276   :  { %414 = vrot.lane.b32.xlu1 %v394_v18, %s1535_s0 }
 0x27e   :  { %v1422_v20 = vpop.eup %1421 }
 0x27f   :  { %v402_v21 = vadd.f32 1.0, %v1422_v20  ;;  %v1424_v23 = vpop.eup %1423 }
 0x281   :  { %1425 = vrcp.f32 %v402_v21 }
 0x28b   :  { %v1426_v24 = vpop.eup %1425 }
 0x28c   :  { %v423_v25 = vmul.f32 %v1426_v24, %v1424_v23 }
 0x2e4   :  { %v406_v26 = vpop.permute.xlu1 %405 }
 0x2e5   :  { %v1178_v27 = vmul.f32 -1.442695, %v406_v26 }
 0x2e7   :  { %1427 = vpow2.f32 %v1178_v27 }
 0x2e8   :  { %v415_v29 = vpop.permute.xlu1 %414 }
 0x2e9   :  { %v1179_v30 = vmul.f32 -1.442695, %v415_v29 }
 0x2eb   :  { %1429 = vpow2.f32 %v1179_v30 }
 0x2f1   :  { %v1428_v32 = vpop.eup %1427 }
 0x2f2   :  { %v410_v33 = vadd.f32 1.0, %v1428_v32 }
 0x2f4   :  { %1431 = vrcp.f32 %v410_v33 }
 0x2f5   :  { %v1430_v34 = vpop.eup %1429 }
 0x2f6   :  { %v419_v37 = vadd.f32 1.0, %v1430_v34 }
 0x2f8   :  { %1433 = vrcp.f32 %v419_v37 }
 0x2fe   :  { %v1432_v36 = vpop.eup %1431 }
 0x2ff   :  { %v422_v39 = vmul.f32 %v1432_v36, %v317_v11 }
 0x301   :  { %v424_v41 = vadd.f32 %v423_v25, %v422_v39 }
 0x302   :  { %v1434_v42 = vpop.eup %1433 }
 0x303   :  { %1435 = vtanh.f32 %v424_v41 }
 0x30d   :  { %v1436_v43 = vpop.eup %1435 }
 0x30e   :  { %v426_v44 = vmul.f32 %v1436_v43, %v1434_v42 }
 0x310   :  { %1180 = vmatmul.mubr.msk.f32.vlgmr.msra.gmra.mrb[4].mxu1 %vm215_vm4, %v426_v44 }
 0x311   :  { %1231 = vmatprep.mubr.msk.f32.mxu1 %vm1537_vm5, %v1533_v3 }
 0x3e3   :  { %v499_v45 = vpop.f32.mrb[4].mxu1 }
 0x3e4   :  { %v1181_v56 = vmul.f32 -1.442695, %v499_v45  ;;  %512 = vrot.lane.b32.xlu0 %v499_v45, %s1535_s0  ;;  %v501_v57 = vpop.f32.mrb[5].mxu1 }
 0x3e5   :  { %521 = vrot.lane.b32.xlu1 %v501_v57, %s1535_s0 }
 0x3e6   :  { %1437 = vpow2.f32 %v1181_v56 }
 0x3e7   :  { %1439 = vtanh.f32 %v501_v57 }
 0x3f0   :  { %v1438_v58 = vpop.eup %1437 }
 0x3f1   :  { %v509_v59 = vadd.f32 1.0, %v1438_v58  ;;  %v1440_v60 = vpop.eup %1439 }
 0x3f3   :  { %1441 = vrcp.f32 %v509_v59 }
 0x3fd   :  { %v1442_v61 = vpop.eup %1441 }
 0x3fe   :  { %v530_v62 = vmul.f32 %v1442_v61, %v1440_v60 }
 0x456   :  { %v513_v63 = vpop.permute.xlu0 %512 }
 0x457   :  { %v1182_v0 = vmul.f32 -1.442695, %v513_v63  ;;  %v522_v1 = vpop.permute.xlu1 %521 }
 0x458   :  { %v1183_v2 = vmul.f32 -1.442695, %v522_v1 }
 0x459   :  { %1443 = vpow2.f32 %v1182_v0 }
 0x45a   :  { %1445 = vpow2.f32 %v1183_v2 }
 0x463   :  { %v1444_v4 = vpop.eup %1443 }
 0x464   :  { %v517_v5 = vadd.f32 1.0, %v1444_v4  ;;  %v1446_v6 = vpop.eup %1445 }
 0x465   :  { %v526_v8 = vadd.f32 1.0, %v1446_v6 }
 0x466   :  { %1447 = vrcp.f32 %v517_v5 }
 0x467   :  { %1449 = vrcp.f32 %v526_v8 }
 0x470   :  { %v1448_v7 = vpop.eup %1447 }
 0x471   :  { %v529_v9 = vmul.f32 %v1448_v7, %v424_v41  ;;  %v1450_v11 = vpop.eup %1449 }
 0x473   :  { %v531_v10 = vadd.f32 %v530_v62, %v529_v9 }
 0x475   :  { %1451 = vtanh.f32 %v531_v10 }
 0x47f   :  { %v1452_v12 = vpop.eup %1451 }
 0x480   :  { %v533_v13 = vmul.f32 %v1452_v12, %v1450_v11 }
 0x482   :  { %1184 = vmatmul.mubr.msk.f32.vlgmr.msra.gmra.mrb[0].mxu0 %vm215_vm4, %v533_v13 }
 0x483   :  { %1311 = vmatpush1.bf16.msra.mxu0 %v1615_v19  ;;  %711 = vmatprep.mubr.f32.mxu0 %v1533_v3 }
 0x484   :  { %1313 = vmatprep.subr.bf16.mxu0 %v1623_v22 }
 0x487   :  { %1315 = vmatpush1.bf16.msra.mxu0 %v1646_v28 }
 0x488   :  { %1317 = vmatprep.subr.bf16.mxu0 %v1655_v31 }
 0x48b   :  { %1319 = vmatpush1.bf16.msra.mxu0 %v1670_v35 }
 0x48c   :  { %1321 = vmatprep.subr.bf16.mxu0 %v1680_v38 }
 0x48f   :  { %1323 = vmatpush1.bf16.msra.mxu0 %v1689_v40 }
 0x490   :  { %1325 = vmatprep.subr.bf16.mxu0 %v1605_v16 }
 0x555   :  { %v606_v14 = vpop.f32.mrb[0].mxu0 }
 0x556   :  { %v611_v15 = vadd.f32 %v606_v14, %v1735_v46  ;;  %v608_v17 = vpop.f32.mrb[1].mxu0 }
 0x557   :  { %v612_v18 = vadd.f32 %v608_v17, %v1737_v47 }
 0x558   :  { %v1185_v20 = vmul.f32 -1.442695, %v611_v15  ;;  %619 = vrot.lane.b32.xlu0 %v611_v15, %s1535_s0 }
 0x559   :  { %628 = vrot.lane.b32.xlu1 %v612_v18, %s1535_s0 }
 0x55a   :  { %1453 = vpow2.f32 %v1185_v20 }
 0x55b   :  { %1455 = vtanh.f32 %v612_v18 }
 0x564   :  { %v1454_v21 = vpop.eup %1453 }
 0x565   :  { %v616_v23 = vadd.f32 1.0, %v1454_v21  ;;  %v1456_v24 = vpop.eup %1455 }
 0x567   :  { %1457 = vrcp.f32 %v616_v23 }
 0x571   :  { %v1458_v25 = vpop.eup %1457 }
 0x572   :  { %v637_v26 = vmul.f32 %v1458_v25, %v1456_v24 }
 0x5ca   :  { %v620_v27 = vpop.permute.xlu0 %619 }
 0x5cb   :  { %v1186_v29 = vmul.f32 -1.442695, %v620_v27  ;;  %v629_v46 = vpop.permute.xlu1 %628 }
 0x5cc   :  { %v1187_v30 = vmul.f32 -1.442695, %v629_v46 }
 0x5cd   :  { %1459 = vpow2.f32 %v1186_v29 }
 0x5ce   :  { %1461 = vpow2.f32 %v1187_v30 }
 0x5d7   :  { %v1460_v32 = vpop.eup %1459 }
 0x5d8   :  { %v624_v47 = vadd.f32 1.0, %v1460_v32  ;;  %v1462_v33 = vpop.eup %1461 }
 0x5d9   :  { %v633_v36 = vadd.f32 1.0, %v1462_v33 }
 0x5da   :  { %1463 = vrcp.f32 %v624_v47 }
 0x5db   :  { %1465 = vrcp.f32 %v633_v36 }
 0x5e4   :  { %v1464_v34 = vpop.eup %1463 }
 0x5e5   :  { %v636_v37 = vmul.f32 %v1464_v34, %v531_v10  ;;  %v1466_v41 = vpop.eup %1465 }
 0x5e7   :  { %v638_v39 = vadd.f32 %v637_v26, %v636_v37 }
 0x5e9   :  { %1467 = vtanh.f32 %v638_v39 }
 0x5f3   :  { %v1468_v42 = vpop.eup %1467 }
 0x5f4   :  { %v640_v43 = vmul.f32 %v1468_v42, %v1466_v41 }
 0x5f6   :  { %1188 = vmatmul.mubr.msk.f32.vlgmr.msra.gmra.mrb[2].mxu0 %vm215_vm4, %v640_v43 }
 0x5f7   :  { %1327 = vmatpush1.bf16.msra.mxu0 %v1615_v19  ;;  %818 = vmatprep.mubr.f32.mxu0 %v1533_v3 }
 0x5f8   :  { %1329 = vmatprep.subr.bf16.mxu0 %v1623_v22 }
 0x5fb   :  { %1331 = vmatpush1.bf16.msra.mxu0 %v1646_v28 }
 0x5fc   :  { %1333 = vmatprep.subr.bf16.mxu0 %v1655_v31 }
 0x5ff   :  { %1335 = vmatpush1.bf16.msra.mxu0 %v1670_v35 }
 0x600   :  { %1337 = vmatprep.subr.bf16.mxu0 %v1680_v38 }
 0x603   :  { %1339 = vmatpush1.bf16.msra.mxu0 %v1689_v40 }
 0x604   :  { %1341 = vmatprep.subr.bf16.mxu0 %v1605_v16 }
 0x6c9   :  { %v713_v44 = vpop.f32.mrb[2].mxu0 }
 0x6ca   :  { %v718_v45 = vadd.f32 %v713_v44, %v1739_v48  ;;  %v715_v56 = vpop.f32.mrb[3].mxu0 }
 0x6cb   :  { %v719_v57 = vadd.f32 %v715_v56, %v1741_v49 }
 0x6cc   :  { %v1189_v58 = vmul.f32 -1.442695, %v718_v45  ;;  %726 = vrot.lane.b32.xlu0 %v718_v45, %s1535_s0 }
 0x6cd   :  { %735 = vrot.lane.b32.xlu1 %v719_v57, %s1535_s0 }
 0x6ce   :  { %1469 = vpow2.f32 %v1189_v58 }
 0x6cf   :  { %1471 = vtanh.f32 %v719_v57 }
 0x6d8   :  { %v1470_v59 = vpop.eup %1469 }
 0x6d9   :  { %v723_v60 = vadd.f32 1.0, %v1470_v59  ;;  %v1472_v61 = vpop.eup %1471 }
 0x6db   :  { %1473 = vrcp.f32 %v723_v60 }
 0x6e5   :  { %v1474_v62 = vpop.eup %1473 }
 0x6e6   :  { %v744_v63 = vmul.f32 %v1474_v62, %v1472_v61 }
 0x73e   :  { %v727_v0 = vpop.permute.xlu0 %726 }
 0x73f   :  { %v1190_v1 = vmul.f32 -1.442695, %v727_v0  ;;  %v736_v48 = vpop.permute.xlu1 %735 }
 0x740   :  { %v1191_v2 = vmul.f32 -1.442695, %v736_v48 }
 0x741   :  { %1475 = vpow2.f32 %v1190_v1 }
 0x742   :  { %1477 = vpow2.f32 %v1191_v2 }
 0x74b   :  { %v1476_v4 = vpop.eup %1475 }
 0x74c   :  { %v731_v49 = vadd.f32 1.0, %v1476_v4  ;;  %v1478_v5 = vpop.eup %1477 }
 0x74d   :  { %v740_v7 = vadd.f32 1.0, %v1478_v5 }
 0x74e   :  { %1479 = vrcp.f32 %v731_v49 }
 0x74f   :  { %1481 = vrcp.f32 %v740_v7  ;;  %v1070_v7 = vld [vmem:[%s1866_s3 + $0x8] sm:$0xff] }
 0x758   :  { %v1480_v6 = vpop.eup %1479 }
 0x759   :  { %v743_v8 = vmul.f32 %v1480_v6, %v638_v39  ;;  %v1482_v10 = vpop.eup %1481  ;;  %v1069_v6 = vld [vmem:[%s1866_s3] sm:$0xff] }
 0x75b   :  { %v745_v9 = vadd.f32 %v744_v63, %v743_v8 }
 0x75d   :  { %1483 = vtanh.f32 %v745_v9 }
 0x767   :  { %v1484_v11 = vpop.eup %1483 }
 0x768   :  { %v747_v12 = vmul.f32 %v1484_v11, %v1482_v10  ;;  %v1072_v10 = vld [vmem:[%s1866_s3 + $0x18] sm:$0xff] }
 0x76a   :  { %1192 = vmatmul.mubr.msk.f32.vlgmr.msra.gmra.mrb[4].mxu0 %vm215_vm4, %v747_v12  ;;  %v1073_v12 = vld [vmem:[%s1866_s3 + $0x20] sm:$0xff] }
 0x76b   :  { %1343 = vmatpush1.bf16.msra.mxu0 %v1615_v19  ;;  %925 = vmatprep.mubr.f32.mxu0 %v1533_v3 }
 0x76c   :  { %1345 = vmatprep.subr.bf16.mxu0 %v1623_v22 }
 0x76f   :  { %1347 = vmatpush1.bf16.msra.mxu0 %v1646_v28 }
 0x770   :  { %1349 = vmatprep.subr.bf16.mxu0 %v1655_v31 }
 0x773   :  { %1351 = vmatpush1.bf16.msra.mxu0 %v1670_v35 }
 0x774   :  { %1353 = vmatprep.subr.bf16.mxu0 %v1680_v38 }
 0x777   :  { %1355 = vmatpush1.bf16.msra.mxu0 %v1689_v40 }
 0x778   :  { %1357 = vmatprep.subr.bf16.mxu0 %v1605_v16 }
 0x83d   :  { %v820_v13 = vpop.f32.mrb[4].mxu0 }
 0x83e   :  { %v825_v14 = vadd.f32 %v820_v13, %v1743_v50  ;;  %v822_v15 = vpop.f32.mrb[5].mxu0  ;;  %v1074_v13 = vld [vmem:[%s1866_s3 + $0x28] sm:$0xff] }
 0x83f   :  { %v826_v17 = vadd.f32 %v822_v15, %v1745_v51  ;;  %v1075_v15 = vld [vmem:[%s1866_s3 + $0x30] sm:$0xff] }
 0x840   :  { %v1193_v18 = vmul.f32 -1.442695, %v825_v14  ;;  %833 = vrot.lane.b32.xlu0 %v825_v14, %s1535_s0  ;;  %v1379_v14 = vpack.c.bf16 %v1074_v13, %v1073_v12 }
 0x841   :  { %842 = vrot.lane.b32.xlu1 %v826_v17, %s1535_s0 }
 0x842   :  { %1485 = vpow2.f32 %v1193_v18 }
 0x843   :  { %1487 = vtanh.f32 %v826_v17  ;;  %v1076_v17 = vld [vmem:[%s1866_s3 + $0x38] sm:$0xff] }
 0x844   :  { %v1382_v18 = vpack.c.bf16 %v1076_v17, %v1075_v15 }
 0x84c   :  { %v1486_v20 = vpop.eup %1485 }
 0x84d   :  { %v830_v21 = vadd.f32 1.0, %v1486_v20  ;;  %v1488_v23 = vpop.eup %1487 }
 0x84f   :  { %1489 = vrcp.f32 %v830_v21 }
 0x859   :  { %v1490_v24 = vpop.eup %1489 }
 0x85a   :  { %v851_v25 = vmul.f32 %v1490_v24, %v1488_v23 }
 0x8b2   :  { %v834_v16 = vpop.permute.xlu0 %833 }
 0x8b3   :  { %v1194_v26 = vmul.f32 -1.442695, %v834_v16  ;;  %v843_v50 = vpop.permute.xlu1 %842 }
 0x8b4   :  { %v1195_v27 = vmul.f32 -1.442695, %v843_v50 }
 0x8b5   :  { %1491 = vpow2.f32 %v1194_v26 }
 0x8b6   :  { %1493 = vpow2.f32 %v1195_v27 }
 0x8bf   :  { %v1492_v29 = vpop.eup %1491 }
 0x8c0   :  { %v838_v51 = vadd.f32 1.0, %v1492_v29  ;;  %v1494_v46 = vpop.eup %1493 }
 0x8c1   :  { %v847_v32 = vadd.f32 1.0, %v1494_v46 }
 0x8c2   :  { %1495 = vrcp.f32 %v838_v51 }
 0x8c3   :  { %1497 = vrcp.f32 %v847_v32 }
 0x8cc   :  { %v1496_v30 = vpop.eup %1495 }
 0x8cd   :  { %v850_v47 = vmul.f32 %v1496_v30, %v745_v9  ;;  %v1498_v34 = vpop.eup %1497  ;;  %v1536_v9 = vmov 0.0|0.0  }
 0x8ce   :  { %1372 = vmatprep.subr.bf16.mxu1 %v1536_v9 }
 0x8cf   :  { %v852_v33 = vadd.f32 %v851_v25, %v850_v47 }
 0x8d1   :  { %1499 = vtanh.f32 %v852_v33 }
 0x8db   :  { %v1500_v36 = vpop.eup %1499 }
 0x8dc   :  { %v854_v37 = vmul.f32 %v1500_v36, %v1498_v34  ;;  %v1204_v34 = vld [vmem:[%s1867_s4] ss:$0 sm:$0xff] }
 0x8de   :  { %1196 = vmatmul.mubr.msk.f32.vlgmr.msra.gmra.mrb[6].mxu0 %vm215_vm4, %v854_v37 }
 0x8df   :  { %1359 = vmatpush1.bf16.msra.mxu0 %v1615_v19  ;;  %1032 = vmatprep.mubr.f32.mxu0 %v1533_v3 }
 0x8e0   :  { %1361 = vmatprep.subr.bf16.mxu0 %v1623_v22 }
 0x8e3   :  { %1363 = vmatpush1.bf16.msra.mxu0 %v1646_v28 }
 0x8e4   :  { %1365 = vmatprep.subr.bf16.mxu0 %v1655_v31 }
 0x8e7   :  { %1367 = vmatpush1.bf16.msra.mxu0 %v1670_v35 }
 0x8e8   :  { %1369 = vmatprep.subr.bf16.mxu0 %v1680_v38 }
 0x8eb   :  { %1371 = vmatpush1.bf16.msra.mxu0 %v1689_v40 }
 0x9b1   :  { %v927_v39 = vpop.f32.mrb[6].mxu0 }
 0x9b2   :  { %v932_v41 = vadd.f32 %v927_v39, %v1747_v52  ;;  %v929_v42 = vpop.f32.mrb[7].mxu0 }
 0x9b3   :  { %v933_v19 = vadd.f32 %v929_v42, %v1749_v53 }
 0x9b4   :  { %v1197_v43 = vmul.f32 -1.442695, %v932_v41  ;;  %940 = vrot.lane.b32.xlu0 %v932_v41, %s1535_s0 }
 0x9b5   :  { %949 = vrot.lane.b32.xlu1 %v933_v19, %s1535_s0 }
 0x9b6   :  { %1501 = vpow2.f32 %v1197_v43 }
 0x9b7   :  { %1503 = vtanh.f32 %v933_v19 }
 0x9c0   :  { %v1502_v22 = vpop.eup %1501 }
 0x9c1   :  { %v937_v28 = vadd.f32 1.0, %v1502_v22  ;;  %v1504_v31 = vpop.eup %1503 }
 0x9c3   :  { %1505 = vrcp.f32 %v937_v28 }
 0x9cd   :  { %v1506_v35 = vpop.eup %1505 }
 0x9ce   :  { %v958_v38 = vmul.f32 %v1506_v35, %v1504_v31 }
 0xa26   :  { %v941_v40 = vpop.permute.xlu0 %940 }
 0xa27   :  { %v1198_v44 = vmul.f32 -1.442695, %v941_v40  ;;  %v950_v52 = vpop.permute.xlu1 %949 }
 0xa28   :  { %v1199_v45 = vmul.f32 -1.442695, %v950_v52 }
 0xa29   :  { %1507 = vpow2.f32 %v1198_v44 }
 0xa2a   :  { %1509 = vpow2.f32 %v1199_v45 }
 0xa33   :  { %v1508_v56 = vpop.eup %1507 }
 0xa34   :  { %v945_v53 = vadd.f32 1.0, %v1508_v56  ;;  %v1510_v57 = vpop.eup %1509 }
 0xa35   :  { %v954_v59 = vadd.f32 1.0, %v1510_v57 }
 0xa36   :  { %1511 = vrcp.f32 %v945_v53 }
 0xa37   :  { %1513 = vrcp.f32 %v954_v59 }
 0xa40   :  { %v1512_v58 = vpop.eup %1511 }
 0xa41   :  { %v957_v60 = vmul.f32 %v1512_v58, %v852_v33  ;;  %v1514_v62 = vpop.eup %1513 }
 0xa43   :  { %v959_v61 = vadd.f32 %v958_v38, %v957_v60 }
 0xa45   :  { %1515 = vtanh.f32 %v959_v61 }
 0xa4f   :  { %v1516_v63 = vpop.eup %1515 }
 0xa50   :  { %v961_v0 = vmul.f32 %v1516_v63, %v1514_v62 }
 0xa52   :  { %1200 = vmatmul.mubr.msk.f32.vlgmr.msra.gmra.mrb[8].mxu0 %vm215_vm4, %v961_v0 }
 0xb25   :  { %v1034_v1 = vpop.f32.mrb[8].mxu0 }
 0xb26   :  { %v1039_v48 = vadd.f32 %v1034_v1, %v1751_v54  ;;  %v1036_v2 = vpop.f32.mrb[9].mxu0  ;;  %v1373_v54 = vpack.c.bf16 %v1070_v7, %v1069_v6 }
 0xb27   :  { %v1040_v4 = vadd.f32 %v1036_v2, %v1753_v55  ;;  %v1071_v55 = vld [vmem:[%s1866_s3 + $0x10] sm:$0xff] }
 0xb28   :  { %v1201_v49 = vmul.f32 -1.442695, %v1039_v48  ;;  %1047 = vrot.lane.b32.xlu0 %v1039_v48, %s1535_s0  ;;  %1374 = vmatpush3.bf16.msra.mxu1 %v1373_v54  ;;  %v1376_v11 = vpack.c.bf16 %v1072_v10, %v1071_v55 }
 0xb29   :  { %1056 = vrot.lane.b32.xlu1 %v1040_v4, %s1535_s0  ;;  %1375 = vmatprep.subr.bf16.mxu1 %v1536_v9 }
 0xb2a   :  { %1517 = vpow2.f32 %v1201_v49 }
 0xb2b   :  { %1519 = vtanh.f32 %v1040_v4 }
 0xb2c   :  { %1377 = vmatpush3.bf16.msra.mxu1 %v1376_v11 }
 0xb2d   :  { %1378 = vmatprep.subr.bf16.mxu1 %v1536_v9 }
 0xb30   :  { %1380 = vmatpush3.bf16.msra.mxu1 %v1379_v14 }
 0xb31   :  { %1381 = vmatprep.subr.bf16.mxu1 %v1536_v9 }
 0xb34   :  { %v1518_v5 = vpop.eup %1517  ;;  %1383 = vmatpush3.bf16.msra.mxu1 %v1382_v18 }
 0xb35   :  { %v1044_v8 = vadd.f32 1.0, %v1518_v5  ;;  %v1520_v20 = vpop.eup %1519 }
 0xb37   :  { %1521 = vrcp.f32 %v1044_v8 }
 0xb41   :  { %v1522_v21 = vpop.eup %1521 }
 0xb42   :  { %v1065_v23 = vmul.f32 %v1522_v21, %v1520_v20 }
 0xb9a   :  { %v1048_v24 = vpop.permute.xlu0 %1047 }
 0xb9b   :  { %v1202_v3 = vmul.f32 -1.442695, %v1048_v24  ;;  %v1057_v25 = vpop.permute.xlu1 %1056 }
 0xb9c   :  { %v1203_v16 = vmul.f32 -1.442695, %v1057_v25 }
 0xb9d   :  { %1523 = vpow2.f32 %v1202_v3 }
 0xb9e   :  { %1525 = vpow2.f32 %v1203_v16 }
 0xba7   :  { %v1524_v26 = vpop.eup %1523 }
 0xba8   :  { %v1052_v50 = vadd.f32 1.0, %v1524_v26  ;;  %v1526_v27 = vpop.eup %1525 }
 0xba9   :  { %v1061_v51 = vadd.f32 1.0, %v1526_v27 }
 0xbaa   :  { %1527 = vrcp.f32 %v1052_v50 }
 0xbab   :  { %1529 = vrcp.f32 %v1061_v51 }
 0xbb4   :  { %v1528_v29 = vpop.eup %1527 }
 0xbb5   :  { %v1064_v46 = vmul.f32 %v1528_v29, %v959_v61  ;;  %v1530_v32 = vpop.eup %1529 }
 0xbb7   :  { %v1066_v30 = vadd.f32 %v1065_v23, %v1064_v46 }
 0xbb9   :  { %1531 = vtanh.f32 %v1066_v30 }
 0xbc3   :  { %v1532_v47 = vpop.eup %1531 }
 0xbc4   :  { %v1068_v33 = vmul.f32 %v1532_v47, %v1530_v32 }
 0xbc6   :  { %1232 = vmatmul.mubr.msk.f32.vlgmr.msra.gmra.mrb[16].mxu1 %vm215_vm4, %v1068_v33 }
 0xc99   :  { %v1153_v36 = vpop.f32.mrb[16].mxu1 }
 0xc9a   :  { %v1154_v37 = vadd.f32 %v1204_v34, %v1153_v36  ;;  %v1233_v39 = vpop.f32.mrb[17].mxu1 }
 0xc9c   :  { %1158 = vst.msk [vmem:[%s1868_s5] sm:$0xff] %vm1157_vm6, %v1154_v37 }

</bundles_post_ra>
